<compile_context>
chip_gen: v7x
topology: tpu7x:2x2x1
jax: 0.10.0
libtpu: 0.0.40
codegen_flags: <defaults>
</compile_context>

<pallas_src>
import jax
import jax.numpy as jnp
from jax.experimental import pallas as pl
from jax.experimental.pallas import tpu as pltpu


def _round_up(n, m):
    return ((n + m - 1) // m) * m


def _mish(v):
    # mish(v) = v * tanh(softplus(v)); tanh(log(1+e)) == e*(e+2)/(e*(e+2)+2).
    # For v > 20 (torch softplus threshold), tanh(softplus(v)) == 1 in f32.
    e = jnp.exp(jnp.minimum(v, 20.0))
    n = e * (e + 2.0)
    t = n * pl.reciprocal(n + 2.0, approx=True)
    return v * jnp.where(v > 20.0, 1.0, t)


def concatmlp_kernel(
    t_ref, xc_ref,
    tw1_ref, tb1_ref, tw2_ref, tb2_ref,
    mw1xc_ref, mw1e_ref, mb1_ref,
    mw2_ref, mb2_ref, mw3_ref, mb3_ref,
    mw4_ref, mb4_ref,
    o_ref,
):
    f32, bf16 = jnp.float32, jnp.bfloat16

    # ---- t_cond MLP: Linear -> mish -> Linear (hidden / embed widths padded to 128) ----
    h = jnp.dot(t_ref[...].astype(bf16), tw1_ref[...], preferred_element_type=f32)
    h = _mish(h + tb1_ref[...])
    embed = jnp.dot(h.astype(bf16), tw2_ref[...], preferred_element_type=f32) + tb2_ref[...]

    # ---- main MLP on cat([x, embed, cond], -1) via split first layer ----
    h1 = (jnp.dot(xc_ref[...].astype(bf16), mw1xc_ref[...], preferred_element_type=f32)
          + jnp.dot(embed.astype(bf16), mw1e_ref[...], preferred_element_type=f32)
          + mb1_ref[...])
    h1 = _mish(h1)
    h2 = _mish(jnp.dot(h1.astype(bf16), mw2_ref[...], preferred_element_type=f32) + mb2_ref[...])
    h3 = _mish(jnp.dot(h2.astype(bf16), mw3_ref[...], preferred_element_type=f32) + mb3_ref[...])

    o_ref[...] = (jnp.dot(h3.astype(bf16), mw4_ref[...], preferred_element_type=f32)
                  + mb4_ref[...]).astype(o_ref.dtype)


def concatmlp_forward(t, x, condition, params, *, block_b=256):
    """t: (B, t_dim), x: (B, action_dim), condition: (B, state_dim). Returns (B, action_dim)."""
    B, t_dim = t.shape
    action_dim = x.shape[-1]
    state_dim = condition.shape[-1]
    H = params["mw2"].shape[0]                      # 256

    # Lane-dense padded widths for the narrow matmuls / output.
    TH = _round_up(2 * t_dim, 128)                  # t_cond hidden width
    TE = _round_up(t_dim, 128)                      # embed width
    OP = _round_up(action_dim, 128)                 # padded output width

    f32, bf16 = jnp.float32, jnp.bfloat16

    def pad2(a, rows, cols):
        return jnp.pad(a, ((0, rows - a.shape[0]), (0, cols - a.shape[1])))

    # ---- host-side parameter prep: bf16 MXU weights (zero-padded), f32 biases ----
    tw1 = pad2(params["tw1"], t_dim, TH).astype(bf16)
    tb1 = pad2(params["tb1"], 1, TH).astype(f32)
    tw2 = pad2(params["tw2"], TH, TE).astype(bf16)
    tb2 = pad2(params["tb2"], 1, TE).astype(f32)
    mw1xc = jnp.concatenate([params["mw1x"], params["mw1c"]], axis=0).astype(bf16)
    mw1e = pad2(params["mw1e"], TE, H).astype(bf16)
    mb1 = params["mb1"].astype(f32)
    mw2 = params["mw2"].astype(bf16)
    mb2 = params["mb2"].astype(f32)
    mw3 = params["mw3"].astype(bf16)
    mb3 = params["mb3"].astype(f32)
    mw4 = pad2(params["mw4"], H, OP).astype(bf16)
    mb4 = pad2(params["mb4"], 1, OP).astype(f32)

    # ---- batch tiling: TB multiple of 8, pad B up so the grid divides evenly ----
    TB = min(block_b, _round_up(B, 8))
    B_pad = _round_up(B, TB)
    xc = jnp.concatenate([x, condition], axis=-1)
    t_p = jnp.pad(t, ((0, B_pad - B), (0, 0))).astype(f32)
    xc_p = jnp.pad(xc, ((0, B_pad - B), (0, 0))).astype(f32)
    grid = (pl.cdiv(B_pad, TB),)

    inputs = (t_p, xc_p, tw1, tb1, tw2, tb2, mw1xc, mw1e, mb1,
              mw2, mb2, mw3, mb3, mw4, mb4)

    def resident(a):
        shp = a.shape
        return pl.BlockSpec(shp, lambda i: (0,) * len(shp))   # constant block -> stays in VMEM

    in_specs = [
        pl.BlockSpec((TB, t_dim), lambda i: (i, 0)),
        pl.BlockSpec((TB, action_dim + state_dim), lambda i: (i, 0)),
    ] + [resident(a) for a in inputs[2:]]
    out_spec = pl.BlockSpec((TB, OP), lambda i: (i, 0))

    flops = 2 * B_pad * (t_dim * TH + TH * TE + (action_dim + state_dim) * H
                         + TE * H + 2 * H * H + H * OP)
    transcendentals = 2 * B_pad * (TH + 3 * H)     # 1 exp + 1 approx-recip per mish element
    bytes_accessed = int(sum(a.size * a.dtype.itemsize for a in inputs) + B_pad * OP * 4)

    out = pl.pallas_call(
        concatmlp_kernel,
        out_shape=jax.ShapeDtypeStruct((B_pad, OP), jnp.float32),
        grid=grid,
        in_specs=in_specs,
        out_specs=out_spec,
        compiler_params=pltpu.CompilerParams(
            dimension_semantics=("parallel",)),
        cost_estimate=pl.CostEstimate(
            flops=int(flops),
            transcendentals=int(transcendentals),
            bytes_accessed=bytes_accessed),
    )(*inputs)
    return out[:B, :action_dim]


def init_params(key, state_dim, action_dim, t_dim):
    """Deterministic synthetic f32 weights matching the PyTorch module's shapes."""
    D = state_dim + action_dim + t_dim
    H = 256
    ks = jax.random.split(key, 12)

    def w(k, i, o, scale=0.05):
        return (scale * jax.random.normal(k, (i, o))).astype(jnp.float32)

    def b(k, o, scale=0.02):
        return (scale * jax.random.normal(k, (1, o))).astype(jnp.float32)

    # Full main first-layer weight, split along the concat axis [x | embed | cond].
    mw1 = w(ks[4], D, H)
    return {
        # t_cond: Linear(t_dim, 2*t_dim), Linear(2*t_dim, t_dim)
        "tw1": w(ks[0], t_dim, 2 * t_dim), "tb1": b(ks[1], 2 * t_dim),
        "tw2": w(ks[2], 2 * t_dim, t_dim), "tb2": b(ks[3], t_dim),
        # main: Linear(D,256), Linear(256,256), Linear(256,256), Linear(256,action_dim)
        "mw1x": mw1[:action_dim, :],
        "mw1e": mw1[action_dim:action_dim + t_dim, :],
        "mw1c": mw1[action_dim + t_dim:, :],
        "mb1": b(ks[5], H),
        "mw2": w(ks[6], H, H), "mb2": b(ks[7], H),
        "mw3": w(ks[8], H, H), "mb3": b(ks[9], H),
        "mw4": w(ks[10], H, action_dim), "mb4": b(ks[11], action_dim),
    }


def reference_forward(t, x, condition, params):
    """Plain-JAX f32 reference (exact mish) for a sanity check."""
    def mish(v):
        sp = jnp.where(v > 20.0, v, jnp.log1p(jnp.exp(jnp.minimum(v, 20.0))))
        return v * jnp.tanh(sp)

    h = mish(t @ params["tw1"] + params["tb1"])
    embed = h @ params["tw2"] + params["tb2"]
    cat = jnp.concatenate([x, embed, condition], axis=-1)
    mw1 = jnp.concatenate([params["mw1x"], params["mw1e"], params["mw1c"]], axis=0)
    h1 = mish(cat @ mw1 + params["mb1"])
    h2 = mish(h1 @ params["mw2"] + params["mb2"])
    h3 = mish(h2 @ params["mw3"] + params["mb3"])
    return h3 @ params["mw4"] + params["mb4"]


if __name__ == "__main__":
    B, state_dim, action_dim, t_dim = 8, 16, 8, 16

    key = jax.random.PRNGKey(0)
    k_t, k_x, k_c, k_p = jax.random.split(key, 4)

    t = jax.random.normal(k_t, (B, t_dim), dtype=jnp.float32)
    x = jax.random.normal(k_x, (B, action_dim), dtype=jnp.float32)
    condition = jax.random.normal(k_c, (B, state_dim), dtype=jnp.float32)

    params = init_params(k_p, state_dim, action_dim, t_dim)

    out = jax.block_until_ready(concatmlp_forward(t, x, condition, params))
    ref = reference_forward(t, x, condition, params)

    assert out.shape == (B, action_dim)
    # bf16 MXU inputs + approx-reciprocal mish => looser tolerance than pure f32.
    max_err = float(jnp.max(jnp.abs(out - ref)))
    assert jnp.allclose(out, ref, atol=2e-2, rtol=2e-2), f"mismatch vs reference: {max_err}"

    print("KERNEL_OK")
</pallas_src>

<mosaic_0001>
module attributes {stable_mosaic.version = 11 : i64} {
  func.func @concatmlp_kernel(%arg0: i32, %arg1: memref<8x16xf32, #tpu.memory_space<vmem>>, %arg2: memref<8x24xf32, #tpu.memory_space<vmem>>, %arg3: memref<16x128xbf16, #tpu.memory_space<vmem>>, %arg4: memref<1x128xf32, #tpu.memory_space<vmem>>, %arg5: memref<128x128xbf16, #tpu.memory_space<vmem>>, %arg6: memref<1x128xf32, #tpu.memory_space<vmem>>, %arg7: memref<24x256xbf16, #tpu.memory_space<vmem>>, %arg8: memref<128x256xbf16, #tpu.memory_space<vmem>>, %arg9: memref<1x256xf32, #tpu.memory_space<vmem>>, %arg10: memref<256x256xbf16, #tpu.memory_space<vmem>>, %arg11: memref<1x256xf32, #tpu.memory_space<vmem>>, %arg12: memref<256x256xbf16, #tpu.memory_space<vmem>>, %arg13: memref<1x256xf32, #tpu.memory_space<vmem>>, %arg14: memref<256x128xbf16, #tpu.memory_space<vmem>>, %arg15: memref<1x128xf32, #tpu.memory_space<vmem>>, %arg16: memref<8x128xf32, #tpu.memory_space<vmem>>) attributes {dimension_semantics = [#tpu.dimension_semantics<parallel>], iteration_bounds = array<i64: 1>, scalar_prefetch = 0 : i64, scratch_operands = 0 : i64, tpu.core_type = #tpu.core_type<tc>, window_params = [{transform_indices = @transform_0, window_bounds = array<i64: 8, 16>}, {transform_indices = @transform_1, window_bounds = array<i64: 8, 24>}, {pipeline_mode = #tpu.pipeline_mode<synchronous>, transform_indices = @transform_2, window_bounds = array<i64: 16, 128>}, {pipeline_mode = #tpu.pipeline_mode<synchronous>, transform_indices = @transform_3, window_bounds = array<i64: 1, 128>}, {pipeline_mode = #tpu.pipeline_mode<synchronous>, transform_indices = @transform_4, window_bounds = array<i64: 128, 128>}, {pipeline_mode = #tpu.pipeline_mode<synchronous>, transform_indices = @transform_5, window_bounds = array<i64: 1, 128>}, {pipeline_mode = #tpu.pipeline_mode<synchronous>, transform_indices = @transform_6, window_bounds = array<i64: 24, 256>}, {pipeline_mode = #tpu.pipeline_mode<synchronous>, transform_indices = @transform_7, window_bounds = array<i64: 128, 256>}, {pipeline_mode = #tpu.pipeline_mode<synchronous>, transform_indices = @transform_8, window_bounds = array<i64: 1, 256>}, {pipeline_mode = #tpu.pipeline_mode<synchronous>, transform_indices = @transform_9, window_bounds = array<i64: 256, 256>}, {pipeline_mode = #tpu.pipeline_mode<synchronous>, transform_indices = @transform_10, window_bounds = array<i64: 1, 256>}, {pipeline_mode = #tpu.pipeline_mode<synchronous>, transform_indices = @transform_11, window_bounds = array<i64: 256, 256>}, {pipeline_mode = #tpu.pipeline_mode<synchronous>, transform_indices = @transform_12, window_bounds = array<i64: 1, 256>}, {pipeline_mode = #tpu.pipeline_mode<synchronous>, transform_indices = @transform_13, window_bounds = array<i64: 256, 128>}, {pipeline_mode = #tpu.pipeline_mode<synchronous>, transform_indices = @transform_14, window_bounds = array<i64: 1, 128>}, {transform_indices = @transform_15, window_bounds = array<i64: 8, 128>}]} {
    %c0 = arith.constant 0 : index
    %c0_0 = arith.constant 0 : index
    %0 = vector.load %arg1[%c0, %c0_0] : memref<8x16xf32, #tpu.memory_space<vmem>>, vector<8x16xf32>
    %1 = arith.truncf %0 : vector<8x16xf32> to vector<8x16xbf16>
    %c0_1 = arith.constant 0 : index
    %c0_2 = arith.constant 0 : index
    %2 = vector.load %arg3[%c0_1, %c0_2] : memref<16x128xbf16, #tpu.memory_space<vmem>>, vector<16x128xbf16>
    %cst = arith.constant dense<0.000000e+00> : vector<8x128xf32>
    %3 = tpu.matmul %1, %2, %cst {dimension_numbers = #tpu.dot_dimension_numbers<[1], [0], [0], [1], [0, 0, 1, 1], [], []>} : vector<8x16xbf16>, vector<16x128xbf16>, vector<8x128xf32> -> vector<8x128xf32>
    %c0_3 = arith.constant 0 : index
    %c0_4 = arith.constant 0 : index
    %4 = vector.load %arg4[%c0_3, %c0_4] : memref<1x128xf32, #tpu.memory_space<vmem>>, vector<1x128xf32>
    %5 = vector.broadcast %4 : vector<1x128xf32> to vector<8x128xf32>
    %6 = arith.addf %3, %5 : vector<8x128xf32>
    %cst_5 = arith.constant 2.000000e+01 : f32
    %7 = vector.broadcast %cst_5 : f32 to vector<8x128xf32>
    %8 = arith.minimumf %6, %7 : vector<8x128xf32>
    %9 = math.exp %8 : vector<8x128xf32>
    %cst_6 = arith.constant 2.000000e+00 : f32
    %10 = vector.broadcast %cst_6 : f32 to vector<8x128xf32>
    %11 = arith.addf %9, %10 : vector<8x128xf32>
    %12 = arith.mulf %9, %11 : vector<8x128xf32>
    %cst_7 = arith.constant 2.000000e+00 : f32
    %13 = vector.broadcast %cst_7 : f32 to vector<8x128xf32>
    %14 = arith.addf %12, %13 : vector<8x128xf32>
    %15 = tpu.reciprocal %14 {approx = true} : vector<8x128xf32> -> vector<8x128xf32>
    %16 = arith.mulf %12, %15 : vector<8x128xf32>
    %cst_8 = arith.constant 2.000000e+01 : f32
    %17 = vector.broadcast %cst_8 : f32 to vector<8x128xf32>
    %18 = arith.cmpf ogt, %6, %17 : vector<8x128xf32>
    %cst_9 = arith.constant 1.000000e+00 : f32
    %19 = vector.broadcast %cst_9 : f32 to vector<8x128xf32>
    %20 = arith.select %18, %19, %16 : vector<8x128xi1>, vector<8x128xf32>
    %21 = arith.mulf %6, %20 : vector<8x128xf32>
    %22 = arith.truncf %21 : vector<8x128xf32> to vector<8x128xbf16>
    %c0_10 = arith.constant 0 : index
    %c0_11 = arith.constant 0 : index
    %23 = vector.load %arg5[%c0_10, %c0_11] : memref<128x128xbf16, #tpu.memory_space<vmem>>, vector<128x128xbf16>
    %cst_12 = arith.constant dense<0.000000e+00> : vector<8x128xf32>
    %24 = tpu.matmul %22, %23, %cst_12 {dimension_numbers = #tpu.dot_dimension_numbers<[1], [0], [0], [1], [0, 0, 1, 1], [], []>} : vector<8x128xbf16>, vector<128x128xbf16>, vector<8x128xf32> -> vector<8x128xf32>
    %c0_13 = arith.constant 0 : index
    %c0_14 = arith.constant 0 : index
    %25 = vector.load %arg6[%c0_13, %c0_14] : memref<1x128xf32, #tpu.memory_space<vmem>>, vector<1x128xf32>
    %26 = vector.broadcast %25 : vector<1x128xf32> to vector<8x128xf32>
    %27 = arith.addf %24, %26 : vector<8x128xf32>
    %c0_15 = arith.constant 0 : index
    %c0_16 = arith.constant 0 : index
    %28 = vector.load %arg2[%c0_15, %c0_16] : memref<8x24xf32, #tpu.memory_space<vmem>>, vector<8x24xf32>
    %29 = arith.truncf %28 : vector<8x24xf32> to vector<8x24xbf16>
    %c0_17 = arith.constant 0 : index
    %c0_18 = arith.constant 0 : index
    %30 = vector.load %arg7[%c0_17, %c0_18] : memref<24x256xbf16, #tpu.memory_space<vmem>>, vector<24x256xbf16>
    %cst_19 = arith.constant dense<0.000000e+00> : vector<8x256xf32>
    %31 = tpu.matmul %29, %30, %cst_19 {dimension_numbers = #tpu.dot_dimension_numbers<[1], [0], [0], [1], [0, 0, 1, 1], [], []>} : vector<8x24xbf16>, vector<24x256xbf16>, vector<8x256xf32> -> vector<8x256xf32>
    %32 = arith.truncf %27 : vector<8x128xf32> to vector<8x128xbf16>
    %c0_20 = arith.constant 0 : index
    %c0_21 = arith.constant 0 : index
    %33 = vector.load %arg8[%c0_20, %c0_21] : memref<128x256xbf16, #tpu.memory_space<vmem>>, vector<128x256xbf16>
    %cst_22 = arith.constant dense<0.000000e+00> : vector<8x256xf32>
    %34 = tpu.matmul %32, %33, %cst_22 {dimension_numbers = #tpu.dot_dimension_numbers<[1], [0], [0], [1], [0, 0, 1, 1], [], []>} : vector<8x128xbf16>, vector<128x256xbf16>, vector<8x256xf32> -> vector<8x256xf32>
    %35 = arith.addf %31, %34 : vector<8x256xf32>
    %c0_23 = arith.constant 0 : index
    %c0_24 = arith.constant 0 : index
    %36 = vector.load %arg9[%c0_23, %c0_24] : memref<1x256xf32, #tpu.memory_space<vmem>>, vector<1x256xf32>
    %37 = vector.broadcast %36 : vector<1x256xf32> to vector<8x256xf32>
    %38 = arith.addf %35, %37 : vector<8x256xf32>
    %cst_25 = arith.constant 2.000000e+01 : f32
    %39 = vector.broadcast %cst_25 : f32 to vector<8x256xf32>
    %40 = arith.minimumf %38, %39 : vector<8x256xf32>
    %41 = math.exp %40 : vector<8x256xf32>
    %cst_26 = arith.constant 2.000000e+00 : f32
    %42 = vector.broadcast %cst_26 : f32 to vector<8x256xf32>
    %43 = arith.addf %41, %42 : vector<8x256xf32>
    %44 = arith.mulf %41, %43 : vector<8x256xf32>
    %cst_27 = arith.constant 2.000000e+00 : f32
    %45 = vector.broadcast %cst_27 : f32 to vector<8x256xf32>
    %46 = arith.addf %44, %45 : vector<8x256xf32>
    %47 = tpu.reciprocal %46 {approx = true} : vector<8x256xf32> -> vector<8x256xf32>
    %48 = arith.mulf %44, %47 : vector<8x256xf32>
    %cst_28 = arith.constant 2.000000e+01 : f32
    %49 = vector.broadcast %cst_28 : f32 to vector<8x256xf32>
    %50 = arith.cmpf ogt, %38, %49 : vector<8x256xf32>
    %cst_29 = arith.constant 1.000000e+00 : f32
    %51 = vector.broadcast %cst_29 : f32 to vector<8x256xf32>
    %52 = arith.select %50, %51, %48 : vector<8x256xi1>, vector<8x256xf32>
    %53 = arith.mulf %38, %52 : vector<8x256xf32>
    %54 = arith.truncf %53 : vector<8x256xf32> to vector<8x256xbf16>
    %c0_30 = arith.constant 0 : index
    %c0_31 = arith.constant 0 : index
    %55 = vector.load %arg10[%c0_30, %c0_31] : memref<256x256xbf16, #tpu.memory_space<vmem>>, vector<256x256xbf16>
    %cst_32 = arith.constant dense<0.000000e+00> : vector<8x256xf32>
    %56 = tpu.matmul %54, %55, %cst_32 {dimension_numbers = #tpu.dot_dimension_numbers<[1], [0], [0], [1], [0, 0, 1, 1], [], []>} : vector<8x256xbf16>, vector<256x256xbf16>, vector<8x256xf32> -> vector<8x256xf32>
    %c0_33 = arith.constant 0 : index
    %c0_34 = arith.constant 0 : index
    %57 = vector.load %arg11[%c0_33, %c0_34] : memref<1x256xf32, #tpu.memory_space<vmem>>, vector<1x256xf32>
    %58 = vector.broadcast %57 : vector<1x256xf32> to vector<8x256xf32>
    %59 = arith.addf %56, %58 : vector<8x256xf32>
    %cst_35 = arith.constant 2.000000e+01 : f32
    %60 = vector.broadcast %cst_35 : f32 to vector<8x256xf32>
    %61 = arith.minimumf %59, %60 : vector<8x256xf32>
    %62 = math.exp %61 : vector<8x256xf32>
    %cst_36 = arith.constant 2.000000e+00 : f32
    %63 = vector.broadcast %cst_36 : f32 to vector<8x256xf32>
    %64 = arith.addf %62, %63 : vector<8x256xf32>
    %65 = arith.mulf %62, %64 : vector<8x256xf32>
    %cst_37 = arith.constant 2.000000e+00 : f32
    %66 = vector.broadcast %cst_37 : f32 to vector<8x256xf32>
    %67 = arith.addf %65, %66 : vector<8x256xf32>
    %68 = tpu.reciprocal %67 {approx = true} : vector<8x256xf32> -> vector<8x256xf32>
    %69 = arith.mulf %65, %68 : vector<8x256xf32>
    %cst_38 = arith.constant 2.000000e+01 : f32
    %70 = vector.broadcast %cst_38 : f32 to vector<8x256xf32>
    %71 = arith.cmpf ogt, %59, %70 : vector<8x256xf32>
    %cst_39 = arith.constant 1.000000e+00 : f32
    %72 = vector.broadcast %cst_39 : f32 to vector<8x256xf32>
    %73 = arith.select %71, %72, %69 : vector<8x256xi1>, vector<8x256xf32>
    %74 = arith.mulf %59, %73 : vector<8x256xf32>
    %75 = arith.truncf %74 : vector<8x256xf32> to vector<8x256xbf16>
    %c0_40 = arith.constant 0 : index
    %c0_41 = arith.constant 0 : index
    %76 = vector.load %arg12[%c0_40, %c0_41] : memref<256x256xbf16, #tpu.memory_space<vmem>>, vector<256x256xbf16>
    %cst_42 = arith.constant dense<0.000000e+00> : vector<8x256xf32>
    %77 = tpu.matmul %75, %76, %cst_42 {dimension_numbers = #tpu.dot_dimension_numbers<[1], [0], [0], [1], [0, 0, 1, 1], [], []>} : vector<8x256xbf16>, vector<256x256xbf16>, vector<8x256xf32> -> vector<8x256xf32>
    %c0_43 = arith.constant 0 : index
    %c0_44 = arith.constant 0 : index
    %78 = vector.load %arg13[%c0_43, %c0_44] : memref<1x256xf32, #tpu.memory_space<vmem>>, vector<1x256xf32>
    %79 = vector.broadcast %78 : vector<1x256xf32> to vector<8x256xf32>
    %80 = arith.addf %77, %79 : vector<8x256xf32>
    %cst_45 = arith.constant 2.000000e+01 : f32
    %81 = vector.broadcast %cst_45 : f32 to vector<8x256xf32>
    %82 = arith.minimumf %80, %81 : vector<8x256xf32>
    %83 = math.exp %82 : vector<8x256xf32>
    %cst_46 = arith.constant 2.000000e+00 : f32
    %84 = vector.broadcast %cst_46 : f32 to vector<8x256xf32>
    %85 = arith.addf %83, %84 : vector<8x256xf32>
    %86 = arith.mulf %83, %85 : vector<8x256xf32>
    %cst_47 = arith.constant 2.000000e+00 : f32
    %87 = vector.broadcast %cst_47 : f32 to vector<8x256xf32>
    %88 = arith.addf %86, %87 : vector<8x256xf32>
    %89 = tpu.reciprocal %88 {approx = true} : vector<8x256xf32> -> vector<8x256xf32>
    %90 = arith.mulf %86, %89 : vector<8x256xf32>
    %cst_48 = arith.constant 2.000000e+01 : f32
    %91 = vector.broadcast %cst_48 : f32 to vector<8x256xf32>
    %92 = arith.cmpf ogt, %80, %91 : vector<8x256xf32>
    %cst_49 = arith.constant 1.000000e+00 : f32
    %93 = vector.broadcast %cst_49 : f32 to vector<8x256xf32>
    %94 = arith.select %92, %93, %90 : vector<8x256xi1>, vector<8x256xf32>
    %95 = arith.mulf %80, %94 : vector<8x256xf32>
    %96 = arith.truncf %95 : vector<8x256xf32> to vector<8x256xbf16>
    %c0_50 = arith.constant 0 : index
    %c0_51 = arith.constant 0 : index
    %97 = vector.load %arg14[%c0_50, %c0_51] : memref<256x128xbf16, #tpu.memory_space<vmem>>, vector<256x128xbf16>
    %cst_52 = arith.constant dense<0.000000e+00> : vector<8x128xf32>
    %98 = tpu.matmul %96, %97, %cst_52 {dimension_numbers = #tpu.dot_dimension_numbers<[1], [0], [0], [1], [0, 0, 1, 1], [], []>} : vector<8x256xbf16>, vector<256x128xbf16>, vector<8x128xf32> -> vector<8x128xf32>
    %c0_53 = arith.constant 0 : index
    %c0_54 = arith.constant 0 : index
    %99 = vector.load %arg15[%c0_53, %c0_54] : memref<1x128xf32, #tpu.memory_space<vmem>>, vector<1x128xf32>
    %100 = vector.broadcast %99 : vector<1x128xf32> to vector<8x128xf32>
    %101 = arith.addf %98, %100 : vector<8x128xf32>
    %c0_55 = arith.constant 0 : index
    %c0_56 = arith.constant 0 : index
    %102 = vector.load %arg16[%c0_55, %c0_56] : memref<8x128xf32, #tpu.memory_space<vmem>>, vector<8x128xf32>
    tpu.vector_store %arg16[%c0_55, %c0_56], %101 {strides = array<i32>} : memref<8x128xf32, #tpu.memory_space<vmem>>, vector<8x128xf32>,
    return
  }
  func.func @transform_0(%arg0: i32) -> (i32, i32) {
    %c0_i32 = arith.constant 0 : i32
    %c0_i32_0 = arith.constant 0 : i32
    return %arg0, %c0_i32 : i32, i32
  }
  func.func @transform_1(%arg0: i32) -> (i32, i32) {
    %c0_i32 = arith.constant 0 : i32
    %c0_i32_0 = arith.constant 0 : i32
    return %arg0, %c0_i32 : i32, i32
  }
  func.func @transform_2(%arg0: i32) -> (i32, i32) {
    %c0_i32 = arith.constant 0 : i32
    %c0_i32_0 = arith.constant 0 : i32
    %c0_i32_1 = arith.constant 0 : i32
    return %c0_i32, %c0_i32_0 : i32, i32
  }
  func.func @transform_3(%arg0: i32) -> (i32, i32) {
    %c0_i32 = arith.constant 0 : i32
    %c0_i32_0 = arith.constant 0 : i32
    %c0_i32_1 = arith.constant 0 : i32
    return %c0_i32, %c0_i32_0 : i32, i32
  }
  func.func @transform_4(%arg0: i32) -> (i32, i32) {
    %c0_i32 = arith.constant 0 : i32
    %c0_i32_0 = arith.constant 0 : i32
    %c0_i32_1 = arith.constant 0 : i32
    return %c0_i32, %c0_i32_0 : i32, i32
  }
  func.func @transform_5(%arg0: i32) -> (i32, i32) {
    %c0_i32 = arith.constant 0 : i32
    %c0_i32_0 = arith.constant 0 : i32
    %c0_i32_1 = arith.constant 0 : i32
    return %c0_i32, %c0_i32_0 : i32, i32
  }
  func.func @transform_6(%arg0: i32) -> (i32, i32) {
    %c0_i32 = arith.constant 0 : i32
    %c0_i32_0 = arith.constant 0 : i32
    %c0_i32_1 = arith.constant 0 : i32
    return %c0_i32, %c0_i32_0 : i32, i32
  }
  func.func @transform_7(%arg0: i32) -> (i32, i32) {
    %c0_i32 = arith.constant 0 : i32
    %c0_i32_0 = arith.constant 0 : i32
    %c0_i32_1 = arith.constant 0 : i32
    return %c0_i32, %c0_i32_0 : i32, i32
  }
  func.func @transform_8(%arg0: i32) -> (i32, i32) {
    %c0_i32 = arith.constant 0 : i32
    %c0_i32_0 = arith.constant 0 : i32
    %c0_i32_1 = arith.constant 0 : i32
    return %c0_i32, %c0_i32_0 : i32, i32
  }
  func.func @transform_9(%arg0: i32) -> (i32, i32) {
    %c0_i32 = arith.constant 0 : i32
    %c0_i32_0 = arith.constant 0 : i32
    %c0_i32_1 = arith.constant 0 : i32
    return %c0_i32, %c0_i32_0 : i32, i32
  }
  func.func @transform_10(%arg0: i32) -> (i32, i32) {
    %c0_i32 = arith.constant 0 : i32
    %c0_i32_0 = arith.constant 0 : i32
    %c0_i32_1 = arith.constant 0 : i32
    return %c0_i32, %c0_i32_0 : i32, i32
  }
  func.func @transform_11(%arg0: i32) -> (i32, i32) {
    %c0_i32 = arith.constant 0 : i32
    %c0_i32_0 = arith.constant 0 : i32
    %c0_i32_1 = arith.constant 0 : i32
    return %c0_i32, %c0_i32_0 : i32, i32
  }
  func.func @transform_12(%arg0: i32) -> (i32, i32) {
    %c0_i32 = arith.constant 0 : i32
    %c0_i32_0 = arith.constant 0 : i32
    %c0_i32_1 = arith.constant 0 : i32
    return %c0_i32, %c0_i32_0 : i32, i32
  }
  func.func @transform_13(%arg0: i32) -> (i32, i32) {
    %c0_i32 = arith.constant 0 : i32
    %c0_i32_0 = arith.constant 0 : i32
    %c0_i32_1 = arith.constant 0 : i32
    return %c0_i32, %c0_i32_0 : i32, i32
  }
  func.func @transform_14(%arg0: i32) -> (i32, i32) {
    %c0_i32 = arith.constant 0 : i32
    %c0_i32_0 = arith.constant 0 : i32
    %c0_i32_1 = arith.constant 0 : i32
    return %c0_i32, %c0_i32_0 : i32, i32
  }
  func.func @transform_15(%arg0: i32) -> (i32, i32) {
    %c0_i32 = arith.constant 0 : i32
    %c0_i32_0 = arith.constant 0 : i32
    return %arg0, %c0_i32 : i32, i32
  }
}

</mosaic_0001>

<bundles_post_ra>
// kernel: tpu_custom_call.1
= control target key start
LH: loop header
LB: loop body
LE: loop exit
PB: predicated region body
PF: predicated region fallthrough
CT: control target
= control target key end

     0   :  { %20 = vsyncpa [#allocation3], 0  ;;  %s2229_s0 = inlined_call_operand.hbm [shape: f32[8,16], index: 0, kind: input, shape index: {}]   ;;  %s2230_s1 = inlined_call_operand.hbm [shape: f32[8,24], index: 1, kind: input, shape index: {}]   ;;  %s2231_s2 = inlined_call_operand.hbm [shape: bf16[16,128], index: 2, kind: input, shape index: {}]   ;;  %s2232_s3 = inlined_call_operand.vmem [shape: f32[1,128], index: 3, kind: input, shape index: {}]   ;;  %s2233_s4 = inlined_call_operand.hbm [shape: bf16[128,128], index: 4, kind: input, shape index: {}]   ;;  %s2234_s5 = inlined_call_operand.vmem [shape: f32[1,128], index: 5, kind: input, shape index: {}]   ;;  %s2235_s6 = inlined_call_operand.hbm [shape: bf16[24,256], index: 6, kind: input, shape index: {}]   ;;  %s2236_s7 = inlined_call_operand.hbm [shape: bf16[128,256], index: 7, kind: input, shape index: {}]   ;;  %s2237_s8 = inlined_call_operand.vmem [shape: f32[1,256], index: 8, kind: input, shape index: {}]   ;;  %s2238_s9 = inlined_call_operand.hbm [shape: bf16[256,256], index: 9, kind: input, shape index: {}]   ;;  %s2239_s10 = inlined_call_operand.vmem [shape: f32[1,256], index: 10, kind: input, shape index: {}]   ;;  %s2240_s11 = inlined_call_operand.hbm [shape: bf16[256,256], index: 11, kind: input, shape index: {}]   ;;  %s2241_s12 = inlined_call_operand.vmem [shape: f32[1,256], index: 12, kind: input, shape index: {}]   ;;  %s2242_s13 = inlined_call_operand.hbm [shape: bf16[256,128], index: 13, kind: input, shape index: {}]   ;;  %s2243_s14 = inlined_call_operand.vmem [shape: f32[1,128], index: 14, kind: input, shape index: {}]   ;;  %s2244_s15 = inlined_call_operand.hbm [shape: f32[8,128], index: 15, kind: output, shape index: {}]  }
   0x1   :  { %21 = vsyncpa [#allocation6], 0 }
   0x2   :  { %22 = vsyncpa [#allocation9], 0 }
   0x3   :  { %23 = vsyncpa [#allocation12], 0 }
   0x4   :  { %24 = vsyncpa [#allocation15], 0 }
   0x5   :  { %25 = vsyncpa [#allocation4], 0  ;;  %s1936_s18 = smov [#allocation5]   ;;  %s1704_s22 = scalar_lea.hbm %s2230_s1, 128 }
   0x6   :  { %s42_s19 = sshll.u32 %s1936_s18, 4  ;;  %p1705_p0 = scmp.ne.s32.totalorder %s2230_s1, %s1704_s22  ;;  %s43_s19 = int_to_ptr.vmem [resolvable:$true] %s42_s19 }
   0x7   :  { %p1708_p1 = scmp.lt.u32.totalorder %s1704_s22, %s2230_s1 }
   0x9   :  { %p1710_p2 = pnand %p1708_p1, %p1705_p0 }
   0xb   :  { %1713 = shalt.err (!%p1710_p2)
}
   0xc   :  { %s1714_s27 = scalar_lea.vmem %s43_s19, 128  ;;  %p1719_p4 = scmp.lt.s32.totalorder %s43_s19, %s43_s19 }
   0xd   :  { %p1715_p3 = scmp.ne.s32.totalorder %s43_s19, %s1714_s27  ;;  %p1720_p5 = scmp.lt.s32.totalorder %s1714_s27, %s1714_s27 }
   0xf   :  { %p1721_p6 = por %p1720_p5, %p1719_p4 }
  0x11   :  { %p1722_p7 = pnand %p1721_p6, %p1715_p3 }
  0x13   :  { %1725 = shalt.err (!%p1722_p7)
}
  0x14   :  { %45 = dma.hbm_to_vmem [thread:$0]  %s2230_s1, 128, %s43_s19, [#allocation6]  }
  0x15   :  { %s1937_s30 = smov [#allocation8]   ;;  %s1726_s20 = scalar_lea.hbm %s2233_s4, 1024 }
  0x16   :  { %s65_s16 = sshll.u32 %s1937_s30, 4  ;;  %p1727_p8 = scmp.ne.s32.totalorder %s2233_s4, %s1726_s20  ;;  %s66_s16 = int_to_ptr.vmem [resolvable:$true] %s65_s16 }
  0x17   :  { %p1730_p9 = scmp.lt.u32.totalorder %s1726_s20, %s2233_s4 }
  0x19   :  { %p1732_p10 = pnand %p1730_p9, %p1727_p8 }
  0x1b   :  { %1735 = shalt.err (!%p1732_p10)
}
  0x1c   :  { %s1736_s25 = scalar_lea.vmem %s66_s16, 1024  ;;  %p1741_p12 = scmp.lt.s32.totalorder %s66_s16, %s66_s16 }
  0x1d   :  { %p1737_p11 = scmp.ne.s32.totalorder %s66_s16, %s1736_s25  ;;  %p1742_p13 = scmp.lt.s32.totalorder %s1736_s25, %s1736_s25 }
  0x1f   :  { %p1743_p0 = por %p1742_p13, %p1741_p12 }
  0x21   :  { %p1744_p1 = pnand %p1743_p0, %p1737_p11 }
  0x23   :  { %1747 = shalt.err (!%p1744_p1)
}
  0x24   :  { %s1938_s1 = smov 64   ;;  %s1939_s19 = smov 4  }
  0x25   :  { %71 = dma.hbm_to_vmem [thread:$0]  %s2233_s4, 1024, %s66_s16, [#allocation9], %s1938_s1, %s1938_s1, %s1939_s19  }
  0x26   :  { %s1940_s28 = smov [#allocation11]   ;;  %s1941_s30 = smov [#allocation14]  }
  0x27   :  { %s91_s29 = sshll.u32 %s1940_s28, 4  ;;  %s119_s17 = sshll.u32 %s1941_s30, 4  ;;  %s92_s29 = int_to_ptr.vmem [resolvable:$true] %s91_s29  ;;  %s2060_s17 = int_to_ptr.vmem [resolvable:$true] %s119_s17 }
  0x28   :  { %s1748_s21 = scalar_lea.hbm %s2236_s7, 2048 }
  0x29   :  { %p1749_p2 = scmp.ne.s32.totalorder %s2236_s7, %s1748_s21  ;;  %p1752_p3 = scmp.lt.u32.totalorder %s1748_s21, %s2236_s7 }
  0x2b   :  { %p1754_p4 = pnand %p1752_p3, %p1749_p2 }
  0x2d   :  { %1757 = shalt.err (!%p1754_p4)
}
  0x2e   :  { %s1758_s4 = scalar_lea.vmem %s92_s29, 2048  ;;  %p1763_p6 = scmp.lt.s32.totalorder %s92_s29, %s92_s29 }
  0x2f   :  { %p1759_p5 = scmp.ne.s32.totalorder %s92_s29, %s1758_s4  ;;  %p1764_p7 = scmp.lt.s32.totalorder %s1758_s4, %s1758_s4 }
  0x31   :  { %p1765_p8 = por %p1764_p7, %p1763_p6 }
  0x33   :  { %p1766_p9 = pnand %p1765_p8, %p1759_p5 }
  0x35   :  { %1769 = shalt.err (!%p1766_p9)
}
  0x36   :  { %s1942_s16 = smov 128   ;;  %s1943_s26 = smov 8  }
  0x37   :  { %97 = dma.hbm_to_vmem [thread:$0]  %s2236_s7, 2048, %s92_s29, [#allocation12], %s1942_s16, %s1942_s16, %s1943_s26  }
  0x38   :  { %s1770_s20 = scalar_lea.hbm %s2240_s11, 4096 }
  0x39   :  { %p1771_p10 = scmp.ne.s32.totalorder %s2240_s11, %s1770_s20  ;;  %p1774_p11 = scmp.lt.u32.totalorder %s1770_s20, %s2240_s11 }
  0x3b   :  { %p1776_p12 = pnand %p1774_p11, %p1771_p10 }
  0x3d   :  { %1779 = shalt.err (!%p1776_p12)
}
  0x3e   :  { %s1780_s25 = scalar_lea.vmem %s2060_s17, 4096  ;;  %p1785_p0 = scmp.lt.s32.totalorder %s2060_s17, %s2060_s17 }
  0x3f   :  { %p1781_p13 = scmp.ne.s32.totalorder %s2060_s17, %s1780_s25  ;;  %p1786_p1 = scmp.lt.s32.totalorder %s1780_s25, %s1780_s25 }
  0x41   :  { %p1787_p2 = por %p1786_p1, %p1785_p0 }
  0x43   :  { %p1788_p3 = pnand %p1787_p2, %p1781_p13 }
  0x45   :  { %1791 = shalt.err (!%p1788_p3)
}
  0x46   :  { %125 = dma.hbm_to_vmem [thread:$0]  %s2240_s11, 4096, %s2060_s17, [#allocation15], %s1942_s16, %s1942_s16, %s1943_s26  }
  0x47   :  { %s1944_s4 = smov [#allocation2]   ;;  %s1945_s28 = smov [#allocation7]  }
  0x48   :  { %s32_s27 = sshll.u32 %s1944_s4, 4  ;;  %s51_s30 = sshll.u32 %s1945_s28, 4  ;;  %s33_s27 = int_to_ptr.vmem [resolvable:$true] %s32_s27  ;;  %s2097_s30 = int_to_ptr.vmem [resolvable:$true] %s51_s30 }
  0x49   :  { %s1792_s21 = scalar_lea.hbm %s2229_s0, 128 }
  0x4a   :  { %p1793_p4 = scmp.ne.s32.totalorder %s2229_s0, %s1792_s21  ;;  %p1796_p5 = scmp.lt.u32.totalorder %s1792_s21, %s2229_s0 }
  0x4c   :  { %p1798_p6 = pnand %p1796_p5, %p1793_p4 }
  0x4e   :  { %1801 = shalt.err (!%p1798_p6)
}
  0x4f   :  { %s1802_s11 = scalar_lea.vmem %s33_s27, 128  ;;  %p1807_p8 = scmp.lt.s32.totalorder %s33_s27, %s33_s27 }
  0x50   :  { %p1803_p7 = scmp.ne.s32.totalorder %s33_s27, %s1802_s11  ;;  %p1808_p9 = scmp.lt.s32.totalorder %s1802_s11, %s1802_s11 }
  0x52   :  { %p1809_p10 = por %p1808_p9, %p1807_p8 }
  0x54   :  { %p1810_p11 = pnand %p1809_p10, %p1803_p7 }
  0x56   :  { %1813 = shalt.err (!%p1810_p11)
}
  0x57   :  { %35 = dma.hbm_to_vmem [thread:$0]  %s2229_s0, 128, %s33_s27, [#allocation3]  }
  0x58   :  { %s1814_s28 = scalar_lea.hbm %s2231_s2, 128 }
  0x59   :  { %p1815_p12 = scmp.ne.s32.totalorder %s2231_s2, %s1814_s28  ;;  %p1818_p13 = scmp.lt.u32.totalorder %s1814_s28, %s2231_s2 }
  0x5b   :  { %p1820_p0 = pnand %p1818_p13, %p1815_p12 }
  0x5d   :  { %1823 = shalt.err (!%p1820_p0)
}
  0x5e   :  { %s1824_s23 = scalar_lea.vmem %s2097_s30, 128  ;;  %p1829_p2 = scmp.lt.s32.totalorder %s2097_s30, %s2097_s30 }
  0x5f   :  { %p1825_p1 = scmp.ne.s32.totalorder %s2097_s30, %s1824_s23  ;;  %p1830_p3 = scmp.lt.s32.totalorder %s1824_s23, %s1824_s23 }
  0x61   :  { %p1831_p4 = por %p1830_p3, %p1829_p2 }
  0x63   :  { %p1832_p5 = pnand %p1831_p4, %p1825_p1 }
  0x65   :  { %1835 = shalt.err (!%p1832_p5)
}
  0x66   :  { %57 = dma.hbm_to_vmem [thread:$0]  %s2231_s2, 128, %s2097_s30, [#allocation6], %s1938_s1, %s1938_s1, %s1939_s19  }
  0x67   :  { %s1946_s24 = smov [#allocation10]   ;;  %s1947_s11 = smov [#allocation13]  }
  0x68   :  { %s79_s25 = sshll.u32 %s1946_s24, 4  ;;  %s105_s17 = sshll.u32 %s1947_s11, 4  ;;  %s80_s25 = int_to_ptr.vmem [resolvable:$true] %s79_s25  ;;  %s2131_s17 = int_to_ptr.vmem [resolvable:$true] %s105_s17 }
  0x69   :  { %s1836_s4 = scalar_lea.hbm %s2235_s6, 384 }
  0x6a   :  { %p1837_p6 = scmp.ne.s32.totalorder %s2235_s6, %s1836_s4  ;;  %p1840_p7 = scmp.lt.u32.totalorder %s1836_s4, %s2235_s6 }
  0x6c   :  { %p1842_p8 = pnand %p1840_p7, %p1837_p6 }
  0x6e   :  { %1845 = shalt.err (!%p1842_p8)
}
  0x6f   :  { %s1846_s2 = scalar_lea.vmem %s80_s25, 384  ;;  %p1851_p10 = scmp.lt.s32.totalorder %s80_s25, %s80_s25 }
  0x70   :  { %p1847_p9 = scmp.ne.s32.totalorder %s80_s25, %s1846_s2  ;;  %p1852_p11 = scmp.lt.s32.totalorder %s1846_s2, %s1846_s2 }
  0x72   :  { %p1853_p12 = por %p1852_p11, %p1851_p10 }
  0x74   :  { %p1854_p13 = pnand %p1853_p12, %p1847_p9 }
  0x76   :  { %1857 = shalt.err (!%p1854_p13)
}
  0x77   :  { %85 = dma.hbm_to_vmem [thread:$0]  %s2235_s6, 384, %s80_s25, [#allocation9], %s1942_s16, %s1942_s16, %s1943_s26  }
  0x78   :  { %s1858_s27 = scalar_lea.hbm %s2238_s9, 4096 }
  0x79   :  { %p1859_p0 = scmp.ne.s32.totalorder %s2238_s9, %s1858_s27  ;;  %p1862_p1 = scmp.lt.u32.totalorder %s1858_s27, %s2238_s9 }
  0x7b   :  { %p1864_p2 = pnand %p1862_p1, %p1859_p0 }
  0x7d   :  { %1867 = shalt.err (!%p1864_p2)
}
  0x7e   :  { %s1868_s4 = scalar_lea.vmem %s2131_s17, 4096  ;;  %p1873_p4 = scmp.lt.s32.totalorder %s2131_s17, %s2131_s17 }
  0x7f   :  { %p1869_p3 = scmp.ne.s32.totalorder %s2131_s17, %s1868_s4  ;;  %p1874_p5 = scmp.lt.s32.totalorder %s1868_s4, %s1868_s4 }
  0x81   :  { %p1875_p6 = por %p1874_p5, %p1873_p4 }
  0x83   :  { %p1876_p7 = pnand %p1875_p6, %p1869_p3 }
  0x85   :  { %1879 = shalt.err (!%p1876_p7)
}
  0x86   :  { %111 = dma.hbm_to_vmem [thread:$0]  %s2238_s9, 4096, %s2131_s17, [#allocation12], %s1942_s16, %s1942_s16, %s1943_s26  }
  0x87   :  { %s1948_s28 = smov [#allocation16]   ;;  %s1880_s2 = scalar_lea.hbm %s2242_s13, 2048 }
  0x88   :  { %s133_s18 = sshll.u32 %s1948_s28, 4  ;;  %p1881_p8 = scmp.ne.s32.totalorder %s2242_s13, %s1880_s2  ;;  %s134_s18 = int_to_ptr.vmem [resolvable:$true] %s133_s18 }
  0x89   :  { %p1884_p9 = scmp.lt.u32.totalorder %s1880_s2, %s2242_s13 }
  0x8b   :  { %p1886_p10 = pnand %p1884_p9, %p1881_p8 }
  0x8d   :  { %1889 = shalt.err (!%p1886_p10)
}
  0x8e   :  { %s1890_s27 = scalar_lea.vmem %s134_s18, 2048  ;;  %p1895_p12 = scmp.lt.s32.totalorder %s134_s18, %s134_s18 }
  0x8f   :  { %p1891_p11 = scmp.ne.s32.totalorder %s134_s18, %s1890_s27  ;;  %p1896_p13 = scmp.lt.s32.totalorder %s1890_s27, %s1890_s27 }
  0x91   :  { %p1897_p0 = por %p1896_p13, %p1895_p12 }
  0x93   :  { %p1898_p1 = pnand %p1897_p0, %p1891_p11 }
  0x95   :  { %1901 = shalt.err (!%p1898_p1)
}
  0x96   :  { %139 = dma.hbm_to_vmem [thread:$0]  %s2242_s13, 2048, %s134_s18, [#allocation15], %s1938_s1, %s1938_s1, %s1939_s19  }
  0x97   :  { %1924 = dma.done.wait [#allocation3], 128  }
  0x98   :  { %1925 = vsyncadd [#allocation3], 4294967168 }
  0x99   :  { %1926 = dma.done.wait [#allocation6], 256  }
  0x9a   :  { %1927 = vsyncadd [#allocation6], 4294967040 }
  0x9b   :  { %1928 = dma.done.wait [#allocation9], 1408  }
  0x9c   :  { %1929 = vsyncadd [#allocation9], 4294965888 }
  0x9d   :  { %1930 = dma.done.wait [#allocation12], 6144  }
  0x9e   :  { %1931 = vsyncadd [#allocation12], 4294961152 }
  0x9f   :  { %1932 = dma.done.wait [#allocation15], 6144  }
  0xa0   :  { %1933 = vsyncadd [#allocation15], 4294961152  ;;  %v1949_v0 = vmov 0.0   ;;  %vm1950_vm0 = vmmov 0   ;;  %v1526_v1 = vld [vmem:[#allocation7] sm:$0xff]   ;;  %v170_v2 = vld [vmem:[#allocation2] sm:$0xff] }
  0xa1   :  { %1483 = vmatprep.subr.bf16.mxu1 %v1949_v0  ;;  %1485 = vmatprep.mubr.msk.bf16.mxu1 %vm1950_vm0, %v1949_v0  ;;  %vm187_vm1 = vcmask 130048   ;;  %v171_v3 = vpack.c.bf16 %v170_v2, %v170_v2  ;;  %v1527_v4 = vld [vmem:[#allocation8] sm:$0xff]   ;;  %v1528_v5 = vld [vmem:[#allocation8 + $0x8] sm:$0xff]   ;;  %v1529_v6 = vld [vmem:[#allocation8 + $0x10] sm:$0xff]   ;;  %vm516_vm3 = vcmask 1043456   ;;  %v1951_v53 = vmov 0  }
  0xa2   :  { %1484 = vmatpush3.bf16.msra.mxu1 %v1526_v1  ;;  %v1530_v7 = vld [vmem:[#allocation8 + $0x18] sm:$0xff]   ;;  %v1531_v8 = vld [vmem:[#allocation8 + $0x20] sm:$0xff]   ;;  %v1532_v9 = vld [vmem:[#allocation8 + $0x28] sm:$0xff]   ;;  %vm512_vm4 = vcmask 195584   ;;  %488 = vmatprep.mubr.bf16.mxu0 %v1951_v53  ;;  %s1952_s7 = smov [#allocation17]  }
  0xa3   :  { %1489 = vmatprep.subr.bf16.mxu1 %v1949_v0  ;;  %v1533_v10 = vld [vmem:[#allocation8 + $0x30] sm:$0xff]   ;;  %v1534_v11 = vld [vmem:[#allocation8 + $0x38] sm:$0xff]   ;;  %v1555_v17 = vld [vmem:[#allocation10 + $0x4] ss:$8 sps:$4 sm:$0xff]   ;;  %s1322_s29 = sshll.u32 %s1952_s7, 4  ;;  %s1323_s29 = int_to_ptr.vmem [resolvable:$true] %s1322_s29 }
  0xa4   :  { %v1535_v12 = vld [vmem:[#allocation11 + $0x4] ss:$8 sps:$4 sm:$0xff]   ;;  %v1537_v13 = vld [vmem:[#allocation11] ss:$8 sps:$4 sm:$0xff]   ;;  %v1538_v14 = vld [vmem:[#allocation11 + $0x14] ss:$8 sps:$4 sm:$0xff]   ;;  %p1907_p3 = scmp.lt.s32.totalorder %s1323_s29, %s1323_s29 }
  0xa5   :  { %1486 = vmatmul.mubr.msk.bf16.vlgmr.msra.gmra.mrb[0].mxu1 %vm187_vm1, %v171_v3  ;;  %456 = vmatprep.subr.bf16.mxu0 %v1535_v12  ;;  %v1540_v15 = vld [vmem:[#allocation11 + $0x10] ss:$8 sps:$4 sm:$0xff]   ;;  %v1541_v16 = vld [vmem:[#allocation11 + $0x24] ss:$8 sps:$4 sm:$0xff]   ;;  %v1543_v18 = vld [vmem:[#allocation11 + $0x20] ss:$8 sps:$4 sm:$0xff]  }
  0xa6   :  { %1505 = vmatprep.mubr.msk.bf16.mxu1 %vm1950_vm0, %v1949_v0  ;;  %1490 = vmatpush3.bf16.msra.mxu1 %v1527_v4  ;;  %v1544_v19 = vld [vmem:[#allocation11 + $0x34] ss:$8 sps:$4 sm:$0xff]   ;;  %v1546_v20 = vld [vmem:[#allocation11 + $0x30] ss:$8 sps:$4 sm:$0xff]   ;;  %v1547_v21 = vld [vmem:[#allocation11 + $0x44] ss:$8 sps:$4 sm:$0xff]  }
  0xa7   :  { %1491 = vmatprep.subr.bf16.mxu1 %v1949_v0  ;;  %457 = vmatpush1.bf16.msra.mxu0 %v1537_v13  ;;  %v1549_v22 = vld [vmem:[#allocation11 + $0x40] ss:$8 sps:$4 sm:$0xff]   ;;  %v1550_v23 = vld [vmem:[#allocation11 + $0x54] ss:$8 sps:$4 sm:$0xff]   ;;  %v1552_v24 = vld [vmem:[#allocation11 + $0x50] ss:$8 sps:$4 sm:$0xff]  }
  0xa8   :  { %458 = vmatprep.subr.bf16.mxu0 %v1538_v14  ;;  %v1556_v25 = vld [vmem:[#allocation11 + $0x64] ss:$8 sps:$4 sm:$0xff]   ;;  %v1558_v26 = vld [vmem:[#allocation11 + $0x60] ss:$8 sps:$4 sm:$0xff]   ;;  %v1335_v27 = vld [vmem:[%s2232_s3] ss:$0 sm:$0xff] }
  0xa9   :  { %v358_v42 = vld [vmem:[#allocation10 + $0x10] sm:$0xff]  ;;  %v1553_v44 = vld [vmem:[#allocation10] ss:$8 sps:$4 sm:$0xff]   ;;  %v1566_v54 = vld [vmem:[#allocation13 + $0x4] ss:$8 sps:$4 sm:$0xff]   ;;  %s1902_s4 = scalar_lea.vmem %s1323_s29, 128 }
  0xaa   :  { %1492 = vmatpush3.bf16.msra.mxu1 %v1528_v5  ;;  %v1366_v46 = vcombine.high %v358_v42, %v358_v42  ;;  %v1365_v47 = vcombine.low %v358_v42, %v358_v42  ;;  %v1561_v49 = vld [vmem:[#allocation11 + $0x74] ss:$8 sps:$4 sm:$0xff]   ;;  %v1563_v51 = vld [vmem:[#allocation11 + $0x70] ss:$8 sps:$4 sm:$0xff]   ;;  %v1564_v60 = vld [vmem:[#allocation13] ss:$8 sps:$4 sm:$0xff]   ;;  %p1903_p2 = scmp.ne.s32.totalorder %s1323_s29, %s1902_s4  ;;  %p1908_p4 = scmp.lt.s32.totalorder %s1902_s4, %s1902_s4 }
  0xab   :  { %1493 = vmatprep.subr.bf16.mxu1 %v1949_v0  ;;  %459 = vmatpush1.bf16.msra.mxu0 %v1540_v15  ;;  %v354_v50 = vld [vmem:[#allocation5] sm:$0xff]  ;;  %v1338_v55 = vld [vmem:[%s2234_s5] ss:$0 sm:$0xff]  ;;  %v1572_v1 = vld [vmem:[#allocation13 + $0x24] ss:$8 sps:$4 sm:$0xff]  }
  0xac   :  { %460 = vmatprep.subr.bf16.mxu0 %v1541_v16  ;;  %v518_v48 = vsel %vm516_vm3, %v1365_v47, 0  ;;  %v355_v52 = vpack.c.bf16 %v354_v50, %v354_v50  ;;  %v1569_v63 = vld [vmem:[#allocation13 + $0x14] ss:$8 sps:$4 sm:$0xff]   ;;  %v1570_v2 = vld [vmem:[#allocation13 + $0x20] ss:$8 sps:$4 sm:$0xff]   ;;  %p1909_p5 = por %p1908_p4, %p1907_p3 }
  0xad   :  { %v1575_v3 = vld [vmem:[#allocation13 + $0x34] ss:$8 sps:$4 sm:$0xff]   ;;  %v1573_v4 = vld [vmem:[#allocation13 + $0x30] ss:$8 sps:$4 sm:$0xff]   ;;  %v1578_v5 = vld [vmem:[#allocation13 + $0x44] ss:$8 sps:$4 sm:$0xff]  }
  0xae   :  { %1494 = vmatpush3.bf16.msra.mxu1 %v1529_v6  ;;  %v1576_v6 = vld [vmem:[#allocation13 + $0x40] ss:$8 sps:$4 sm:$0xff]   ;;  %v1579_v12 = vld [vmem:[#allocation13 + $0x50] ss:$8 sps:$4 sm:$0xff]   ;;  %v1584_v13 = vld [vmem:[#allocation13 + $0x64] ss:$8 sps:$4 sm:$0xff]   ;;  %p1910_p6 = pnand %p1909_p5, %p1903_p2 }
  0xaf   :  { %1495 = vmatprep.subr.bf16.mxu1 %v1949_v0  ;;  %461 = vmatpush1.bf16.msra.mxu0 %v1543_v18  ;;  %v1582_v14 = vld [vmem:[#allocation13 + $0x60] ss:$8 sps:$4 sm:$0xff]   ;;  %v1587_v15 = vld [vmem:[#allocation13 + $0x74] ss:$8 sps:$4 sm:$0xff]   ;;  %v1585_v16 = vld [vmem:[#allocation13 + $0x70] ss:$8 sps:$4 sm:$0xff]  }
  0xb0   :  { %462 = vmatprep.subr.bf16.mxu0 %v1544_v19  ;;  %v1588_v18 = vld [vmem:[#allocation13 + $0x80] ss:$8 sps:$4 sm:$0xff]   ;;  %v1593_v19 = vld [vmem:[#allocation13 + $0x94] ss:$8 sps:$4 sm:$0xff]  }
  0xb1   :  { %v1624_v42 = vld [vmem:[#allocation14 + $0x40] ss:$8 sps:$4 sm:$0xff]  }
  0xb2   :  { %1496 = vmatpush3.bf16.msra.mxu1 %v1530_v7 }
  0xb3   :  { %1497 = vmatprep.subr.bf16.mxu1 %v1949_v0  ;;  %463 = vmatpush1.bf16.msra.mxu0 %v1546_v20  ;;  %v1591_v20 = vld [vmem:[#allocation13 + $0x90] ss:$8 sps:$4 sm:$0xff]  }
  0xb4   :  { %464 = vmatprep.subr.bf16.mxu0 %v1547_v21  ;;  %v1596_v21 = vld [vmem:[#allocation13 + $0xa4] ss:$8 sps:$4 sm:$0xff]  }
  0xb6   :  { %1498 = vmatpush3.bf16.msra.mxu1 %v1531_v8 }
  0xb7   :  { %1499 = vmatprep.subr.bf16.mxu1 %v1949_v0  ;;  %465 = vmatpush1.bf16.msra.mxu0 %v1549_v22  ;;  %v1594_v22 = vld [vmem:[#allocation13 + $0xa0] ss:$8 sps:$4 sm:$0xff]  }
  0xb8   :  { %466 = vmatprep.subr.bf16.mxu0 %v1550_v23  ;;  %v1599_v23 = vld [vmem:[#allocation13 + $0xb4] ss:$8 sps:$4 sm:$0xff]  }
  0xba   :  { %1500 = vmatpush3.bf16.msra.mxu1 %v1532_v9 }
  0xbb   :  { %1501 = vmatprep.subr.bf16.mxu1 %v1949_v0  ;;  %467 = vmatpush1.bf16.msra.mxu0 %v1552_v24  ;;  %v1597_v24 = vld [vmem:[#allocation13 + $0xb0] ss:$8 sps:$4 sm:$0xff]  }
  0xbc   :  { %468 = vmatprep.subr.bf16.mxu0 %v1556_v25  ;;  %v1602_v25 = vld [vmem:[#allocation13 + $0xc4] ss:$8 sps:$4 sm:$0xff]  }
  0xbe   :  { %1502 = vmatpush3.bf16.msra.mxu1 %v1533_v10 }
  0xbf   :  { %1503 = vmatprep.subr.bf16.mxu1 %v1949_v0  ;;  %469 = vmatpush1.bf16.msra.mxu0 %v1558_v26  ;;  %v1567_v0 = vld [vmem:[#allocation13 + $0x10] ss:$8 sps:$4 sm:$0xff]   ;;  %v1600_v26 = vld [vmem:[#allocation13 + $0xc0] ss:$8 sps:$4 sm:$0xff]  }
  0xc0   :  { %470 = vmatprep.subr.bf16.mxu0 %v1561_v49 }
  0xc2   :  { %1504 = vmatpush3.bf16.msra.mxu1 %v1534_v11  ;;  %v1581_v11 = vld [vmem:[#allocation13 + $0x54] ss:$8 sps:$4 sm:$0xff]  }
  0xc3   :  { %523 = vmatprep.subr.bf16.mxu1 %v1555_v17  ;;  %471 = vmatpush1.bf16.msra.mxu0 %v1563_v51  ;;  %v1590_v17 = vld [vmem:[#allocation13 + $0x84] ss:$8 sps:$4 sm:$0xff]  }
  0xc4   :  { %806 = vmatprep.subr.bf16.mxu0 %v1566_v54 }
 0x178   :  { %v225_v28 = vpop.f32.mrb[0].mxu1 }
 0x179   :  { %v226_v29 = vadd.f32 %v1335_v27, %v225_v28  ;;  %v1487_v30 = vpop.f32.mrb[1].mxu1  ;;  %v1605_v27 = vld [vmem:[#allocation13 + $0xd4] ss:$8 sps:$4 sm:$0xff]   ;;  %v1603_v28 = vld [vmem:[#allocation13 + $0xd0] ss:$8 sps:$4 sm:$0xff]  }
 0x17a   :  { %v228_v31 = vpop.f32.mrb[2].mxu1  ;;  %v1606_v30 = vld [vmem:[#allocation13 + $0xe0] ss:$8 sps:$4 sm:$0xff]  }
 0x17b   :  { %v231_v32 = vmin.f32 %v226_v29, 20.0  ;;  %v1488_v33 = vpop.f32.mrb[3].mxu1  ;;  %vm239_vm2 = vcmp.gt.f32.partialorder %v226_v29, 20.0  ;;  %v1609_v31 = vld [vmem:[#allocation13 + $0xf0] ss:$8 sps:$4 sm:$0xff]  }
 0x17c   :  { %v1612_v33 = vld [vmem:[#allocation14] ss:$8 sps:$4 sm:$0xff]  }
 0x17d   :  { %v232_v34 = vmul.f32 1.442695, %v231_v32  ;;  %v1611_v32 = vld [vmem:[#allocation13 + $0xf4] ss:$8 sps:$4 sm:$0xff]  }
 0x17f   :  { %1676 = vpow2.f32 %v232_v34  ;;  %v1614_v34 = vld [vmem:[#allocation14 + $0x4] ss:$8 sps:$4 sm:$0xff]  }
 0x189   :  { %v1677_v35 = vpop.eup %1676 }
 0x18a   :  { %v234_v36 = vadd.f32 2.0, %v1677_v35 }
 0x18c   :  { %v235_v37 = vmul.f32 %v1677_v35, %v234_v36  ;;  %v1617_v35 = vld [vmem:[#allocation14 + $0x14] ss:$8 sps:$4 sm:$0xff]   ;;  %v1615_v36 = vld [vmem:[#allocation14 + $0x10] ss:$8 sps:$4 sm:$0xff]  }
 0x18e   :  { %v236_v38 = vadd.f32 2.0, %v235_v37 }
 0x190   :  { %1678 = vrcp.f32 %v236_v38  ;;  %v1618_v38 = vld [vmem:[#allocation14 + $0x20] ss:$8 sps:$4 sm:$0xff]  }
 0x19a   :  { %v1679_v39 = vpop.eup %1678 }
 0x19b   :  { %v238_v40 = vmul.f32 %v1679_v39, %v235_v37  ;;  %v1620_v37 = vld [vmem:[#allocation14 + $0x24] ss:$8 sps:$4 sm:$0xff]   ;;  %v1623_v39 = vld [vmem:[#allocation14 + $0x34] ss:$8 sps:$4 sm:$0xff]  }
 0x19d   :  { %v240_v41 = vsel %vm239_vm2, 1.0, %v238_v40  ;;  %v1621_v40 = vld [vmem:[#allocation14 + $0x30] ss:$8 sps:$4 sm:$0xff]  }
 0x19e   :  { %v241_v43 = vmul.f32 %v240_v41, %v226_v29  ;;  %v1608_v29 = vld [vmem:[#allocation13 + $0xe4] ss:$8 sps:$4 sm:$0xff]  }
 0x19f   :  { %v1626_v41 = vld [vmem:[#allocation14 + $0x44] ss:$8 sps:$4 sm:$0xff]  }
 0x1a0   :  { %v242_v45 = vpack.c.bf16 %v241_v43, %v241_v43  ;;  %v566_v43 = vlaneseq }
 0x1a2   :  { %1506 = vmatmul.mubr.bf16.vlgmr.msra.gmra.mrb[4].mxu1 %v242_v45 }
 0x1a3   :  { %524 = vmatpush1.bf16.msra.mxu1 %v1553_v44  ;;  %555 = vmatprep.mubr.bf16.mxu1 %v1951_v53  ;;  %v567_v44 = vshrl.u32 %v566_v43, 7 }
 0x1a4   :  { %1367 = vmatprep.subr.msk.bf16.mxu1 %vm516_vm3, %v1366_v46  ;;  %v564_v46 = vld [vmem:[%s2237_s8] sm:$0x3] }
 0x1a5   :  { %v2193_v45 = vsub.s32 0, %v567_v44  ;;  %v2198_v47 = vsub.s32 1, %v567_v44 }
 0x1a7   :  { %526 = vmatpush1.bf16.msra.mxu1 %v518_v48  ;;  %v569_v48 = vrot.slane %v564_v46, %v2193_v45  ;;  %v573_v50 = vrot.slane %v564_v46, %v2198_v47 }
 0x1a8   :  { %1075 = vmatprep.subr.bf16.mxu1 %v1614_v34  ;;  %v1656_v34 = vld [vmem:[#allocation14 + $0xe4] ss:$8 sps:$4 sm:$0xff]  }
 0x1aa   :  { %1368 = vmatmul.mubr.msk.bf16.vlgmr.msra.gmra.mrb[8].mxu1 %vm512_vm4, %v355_v52 }
 0x1ab   :  { %1076 = vmatpush1.bf16.msra.mxu1 %v1612_v33  ;;  %v1651_v33 = vld [vmem:[#allocation14 + $0xd0] ss:$8 sps:$4 sm:$0xff]  }
 0x1ac   :  { %1077 = vmatprep.subr.bf16.mxu1 %v1617_v35  ;;  %v1654_v35 = vld [vmem:[#allocation14 + $0xe0] ss:$8 sps:$4 sm:$0xff]  }
 0x1af   :  { %1078 = vmatpush1.bf16.msra.mxu1 %v1615_v36  ;;  %v1659_v36 = vld [vmem:[#allocation14 + $0xf4] ss:$8 sps:$4 sm:$0xff]  }
 0x1b0   :  { %1079 = vmatprep.subr.bf16.mxu1 %v1620_v37  ;;  %v1657_v37 = vld [vmem:[#allocation14 + $0xf0] ss:$8 sps:$4 sm:$0xff]  }
 0x1b3   :  { %1080 = vmatpush1.bf16.msra.mxu1 %v1618_v38  ;;  %v634_v38 = vld [vmem:[%s2239_s10] sm:$0x3] }
 0x1b4   :  { %1081 = vmatprep.subr.bf16.mxu1 %v1623_v39  ;;  %v639_v39 = vrot.slane %v634_v38, %v2193_v45 }
 0x1b7   :  { %1082 = vmatpush1.bf16.msra.mxu1 %v1621_v40  ;;  %v643_v40 = vrot.slane %v634_v38, %v2198_v47 }
 0x1b8   :  { %1083 = vmatprep.subr.bf16.mxu1 %v1626_v41 }
 0x1bb   :  { %1084 = vmatpush1.bf16.msra.mxu1 %v1624_v42 }
 0x275   :  { %v348_v56 = vpop.f32.mrb[4].mxu1 }
 0x276   :  { %v349_v57 = vadd.f32 %v1338_v55, %v348_v56  ;;  %v1507_v58 = vpop.f32.mrb[5].mxu1 }
 0x277   :  { %v351_v59 = vpop.f32.mrb[6].mxu1 }
 0x278   :  { %v359_v61 = vpack.c.bf16 %v349_v57, %v349_v57  ;;  %v1508_v62 = vpop.f32.mrb[7].mxu1 }
 0x27a   :  { %489 = vmatmul.mubr.bf16.vlgmr.msra.gmra.mrb[0].mxu0 %v359_v61 }
 0x27b   :  { %807 = vmatpush1.bf16.msra.mxu0 %v1564_v60 }
 0x27c   :  { %808 = vmatprep.subr.bf16.mxu0 %v1569_v63 }
 0x27d   :  { %v2189_v7 = vpop.f32.mrb[8].mxu1 }
 0x27e   :  { %v2191_v8 = vpop.f32.mrb[9].mxu1 }
 0x27f   :  { %809 = vmatpush1.bf16.msra.mxu0 %v1567_v0  ;;  %v561_v9 = vpop.f32.mrb[10].mxu1 }
 0x280   :  { %810 = vmatprep.subr.bf16.mxu0 %v1572_v1  ;;  %v562_v10 = vpop.f32.mrb[11].mxu1 }
 0x283   :  { %811 = vmatpush1.bf16.msra.mxu0 %v1570_v2 }
 0x284   :  { %812 = vmatprep.subr.bf16.mxu0 %v1575_v3 }
 0x287   :  { %813 = vmatpush1.bf16.msra.mxu0 %v1573_v4 }
 0x288   :  { %814 = vmatprep.subr.bf16.mxu0 %v1578_v5 }
 0x28b   :  { %815 = vmatpush1.bf16.msra.mxu0 %v1576_v6 }
 0x28c   :  { %816 = vmatprep.subr.bf16.mxu0 %v1581_v11 }
 0x28f   :  { %817 = vmatpush1.bf16.msra.mxu0 %v1579_v12 }
 0x290   :  { %818 = vmatprep.subr.bf16.mxu0 %v1584_v13 }
 0x293   :  { %819 = vmatpush1.bf16.msra.mxu0 %v1582_v14 }
 0x294   :  { %820 = vmatprep.subr.bf16.mxu0 %v1587_v15 }
 0x297   :  { %821 = vmatpush1.bf16.msra.mxu0 %v1585_v16  ;;  %v1629_v16 = vld [vmem:[#allocation14 + $0x54] ss:$8 sps:$4 sm:$0xff]  }
 0x298   :  { %822 = vmatprep.subr.bf16.mxu0 %v1590_v17  ;;  %v1627_v17 = vld [vmem:[#allocation14 + $0x50] ss:$8 sps:$4 sm:$0xff]   ;;  %1085 = vmatprep.subr.bf16.mxu1 %v1629_v16  ;;  %v1669_v16 = vld [vmem:[#allocation16 + $0x20] sm:$0xff]  }
 0x299   :  { %1086 = vmatpush1.bf16.msra.mxu1 %v1627_v17  ;;  %v1670_v17 = vld [vmem:[#allocation16 + $0x68] sm:$0xff]  }
 0x29b   :  { %823 = vmatpush1.bf16.msra.mxu0 %v1588_v18  ;;  %v1632_v18 = vld [vmem:[#allocation14 + $0x64] ss:$8 sps:$4 sm:$0xff]  }
 0x29c   :  { %824 = vmatprep.subr.bf16.mxu0 %v1593_v19  ;;  %v1630_v19 = vld [vmem:[#allocation14 + $0x60] ss:$8 sps:$4 sm:$0xff]   ;;  %1087 = vmatprep.subr.bf16.mxu1 %v1632_v18 }
 0x29d   :  { %1088 = vmatpush1.bf16.msra.mxu1 %v1630_v19  ;;  %v1671_v18 = vld [vmem:[#allocation16 + $0x28] sm:$0xff]   ;;  %v1672_v19 = vld [vmem:[#allocation16 + $0x70] sm:$0xff]  }
 0x29f   :  { %825 = vmatpush1.bf16.msra.mxu0 %v1591_v20  ;;  %v1635_v20 = vld [vmem:[#allocation14 + $0x74] ss:$8 sps:$4 sm:$0xff]  }
 0x2a0   :  { %826 = vmatprep.subr.bf16.mxu0 %v1596_v21  ;;  %v1633_v21 = vld [vmem:[#allocation14 + $0x70] ss:$8 sps:$4 sm:$0xff]   ;;  %1089 = vmatprep.subr.bf16.mxu1 %v1635_v20 }
 0x2a1   :  { %1090 = vmatpush1.bf16.msra.mxu1 %v1633_v21  ;;  %v1673_v20 = vld [vmem:[#allocation16 + $0x30] sm:$0xff]   ;;  %v1674_v21 = vld [vmem:[#allocation16 + $0x78] sm:$0xff]  }
 0x2a3   :  { %827 = vmatpush1.bf16.msra.mxu0 %v1594_v22  ;;  %v1638_v22 = vld [vmem:[#allocation14 + $0x84] ss:$8 sps:$4 sm:$0xff]  }
 0x2a4   :  { %828 = vmatprep.subr.bf16.mxu0 %v1599_v23  ;;  %v1636_v23 = vld [vmem:[#allocation14 + $0x80] ss:$8 sps:$4 sm:$0xff]   ;;  %1091 = vmatprep.subr.bf16.mxu1 %v1638_v22  ;;  %v1675_v22 = vld [vmem:[#allocation16 + $0x38] sm:$0xff]  }
 0x2a5   :  { %1092 = vmatpush1.bf16.msra.mxu1 %v1636_v23  ;;  %v903_v23 = vld [vmem:[%s2241_s12] sm:$0x3] }
 0x2a7   :  { %829 = vmatpush1.bf16.msra.mxu0 %v1597_v24  ;;  %v1641_v24 = vld [vmem:[#allocation14 + $0x94] ss:$8 sps:$4 sm:$0xff]  }
 0x2a8   :  { %830 = vmatprep.subr.bf16.mxu0 %v1602_v25  ;;  %v1639_v25 = vld [vmem:[#allocation14 + $0x90] ss:$8 sps:$4 sm:$0xff]   ;;  %1093 = vmatprep.subr.bf16.mxu1 %v1641_v24  ;;  %v908_v24 = vrot.slane %v903_v23, %v2193_v45 }
 0x2a9   :  { %1094 = vmatpush1.bf16.msra.mxu1 %v1639_v25  ;;  %v912_v25 = vrot.slane %v903_v23, %v2198_v47 }
 0x2ab   :  { %831 = vmatpush1.bf16.msra.mxu0 %v1600_v26  ;;  %v1644_v26 = vld [vmem:[#allocation14 + $0xa4] ss:$8 sps:$4 sm:$0xff]  }
 0x2ac   :  { %832 = vmatprep.subr.bf16.mxu0 %v1605_v27  ;;  %v1642_v27 = vld [vmem:[#allocation14 + $0xa0] ss:$8 sps:$4 sm:$0xff]   ;;  %1095 = vmatprep.subr.bf16.mxu1 %v1644_v26 }
 0x2ad   :  { %1096 = vmatpush1.bf16.msra.mxu1 %v1642_v27 }
 0x2af   :  { %833 = vmatpush1.bf16.msra.mxu0 %v1603_v28  ;;  %v1647_v28 = vld [vmem:[#allocation14 + $0xb4] ss:$8 sps:$4 sm:$0xff]  }
 0x2b0   :  { %834 = vmatprep.subr.bf16.mxu0 %v1608_v29  ;;  %v1645_v29 = vld [vmem:[#allocation14 + $0xb0] ss:$8 sps:$4 sm:$0xff]   ;;  %1097 = vmatprep.subr.bf16.mxu1 %v1647_v28 }
 0x2b1   :  { %1098 = vmatpush1.bf16.msra.mxu1 %v1645_v29 }
 0x2b3   :  { %835 = vmatpush1.bf16.msra.mxu0 %v1606_v30  ;;  %v1650_v30 = vld [vmem:[#allocation14 + $0xc4] ss:$8 sps:$4 sm:$0xff]  }
 0x2b4   :  { %836 = vmatprep.subr.bf16.mxu0 %v1611_v32  ;;  %1099 = vmatprep.subr.bf16.mxu1 %v1650_v30  ;;  %v1653_v32 = vld [vmem:[#allocation14 + $0xd4] ss:$8 sps:$4 sm:$0xff]  }
 0x2b7   :  { %837 = vmatpush1.bf16.msra.mxu0 %v1609_v31  ;;  %v1648_v31 = vld [vmem:[#allocation14 + $0xc0] ss:$8 sps:$4 sm:$0xff]  }
 0x2b8   :  { %1100 = vmatpush1.bf16.msra.mxu1 %v1648_v31 }
 0x2b9   :  { %1101 = vmatprep.subr.bf16.mxu1 %v1653_v32 }
 0x2bc   :  { %1102 = vmatpush1.bf16.msra.mxu1 %v1651_v33 }
 0x2bd   :  { %1103 = vmatprep.subr.bf16.mxu1 %v1656_v34 }
 0x2c0   :  { %1104 = vmatpush1.bf16.msra.mxu1 %v1654_v35 }
 0x2c1   :  { %1105 = vmatprep.subr.bf16.mxu1 %v1659_v36 }
 0x2c4   :  { %1106 = vmatpush1.bf16.msra.mxu1 %v1657_v37 }
 0x34d   :  { %v490_v49 = vpop.f32.mrb[0].mxu0 }
 0x34e   :  { %v558_v51 = vadd.f32 %v2189_v7, %v490_v49  ;;  %v492_v52 = vpop.f32.mrb[1].mxu0 }
 0x34f   :  { %v560_v53 = vadd.f32 %v2191_v8, %v492_v52  ;;  %v494_v54 = vpop.f32.mrb[2].mxu0 }
 0x350   :  { %v576_v55 = vadd.f32 %v569_v48, %v558_v51  ;;  %v495_v56 = vpop.f32.mrb[3].mxu0 }
 0x351   :  { %v577_v57 = vadd.f32 %v573_v50, %v560_v53 }
 0x352   :  { %v578_v58 = vmin.f32 %v576_v55, 20.0  ;;  %vm594_vm5 = vcmp.gt.f32.partialorder %v576_v55, 20.0 }
 0x353   :  { %v579_v59 = vmin.f32 %v577_v57, 20.0  ;;  %vm595_vm6 = vcmp.gt.f32.partialorder %v577_v57, 20.0 }
 0x354   :  { %v580_v60 = vmul.f32 1.442695, %v578_v58 }
 0x355   :  { %v582_v61 = vmul.f32 1.442695, %v579_v59 }
 0x356   :  { %1680 = vpow2.f32 %v580_v60 }
 0x357   :  { %1682 = vpow2.f32 %v582_v61 }
 0x360   :  { %v1681_v62 = vpop.eup %1680 }
 0x361   :  { %v1683_v63 = vpop.eup %1682  ;;  %v584_v0 = vadd.f32 2.0, %v1681_v62 }
 0x362   :  { %v585_v1 = vadd.f32 2.0, %v1683_v63 }
 0x363   :  { %v586_v2 = vmul.f32 %v1681_v62, %v584_v0 }
 0x364   :  { %v587_v3 = vmul.f32 %v1683_v63, %v585_v1 }
 0x365   :  { %v588_v4 = vadd.f32 2.0, %v586_v2 }
 0x366   :  { %v589_v5 = vadd.f32 2.0, %v587_v3 }
 0x367   :  { %1684 = vrcp.f32 %v588_v4 }
 0x368   :  { %1686 = vrcp.f32 %v589_v5 }
 0x371   :  { %v1685_v6 = vpop.eup %1684 }
 0x372   :  { %v1687_v7 = vpop.eup %1686  ;;  %v592_v8 = vmul.f32 %v1685_v6, %v586_v2 }
 0x373   :  { %v593_v9 = vmul.f32 %v1687_v7, %v587_v3  ;;  %v1660_v7 = vld [vmem:[#allocation16 + $0x40] sm:$0xff]  }
 0x374   :  { %v596_v10 = vsel %vm594_vm5, 1.0, %v592_v8  ;;  %v1661_v8 = vld [vmem:[#allocation16] sm:$0xff]   ;;  %1461 = vmatprep.subr.bf16.mxu0 %v1660_v7 }
 0x375   :  { %v598_v11 = vmul.f32 %v596_v10, %v576_v55  ;;  %v597_v12 = vsel %vm595_vm6, 1.0, %v593_v9  ;;  %v1662_v9 = vld [vmem:[#allocation16 + $0x48] sm:$0xff]  }
 0x376   :  { %v599_v13 = vmul.f32 %v597_v12, %v577_v57  ;;  %v1663_v10 = vld [vmem:[#allocation16 + $0x8] sm:$0xff]   ;;  %v1665_v12 = vld [vmem:[#allocation16 + $0x10] sm:$0xff]  }
 0x377   :  { %v600_v15 = vpack.c.bf16 %v598_v11, %v598_v11  ;;  %v1664_v11 = vld [vmem:[#allocation16 + $0x50] sm:$0xff]  }
 0x378   :  { %v601_v14 = vpack.c.bf16 %v599_v13, %v599_v13  ;;  %v1666_v13 = vld [vmem:[#allocation16 + $0x58] sm:$0xff]  }
 0x37a   :  { %838 = vmatprep.mubr.bf16.mxu0 %v601_v14  ;;  %v1667_v14 = vld [vmem:[#allocation16 + $0x18] sm:$0xff]  }
 0x37b   :  { %839 = vmatmul.mubr.bf16.vlgmr.msra.gmra.mrb[4].mxu0 %v600_v15  ;;  %v1668_v15 = vld [vmem:[#allocation16 + $0x60] sm:$0xff]  }
 0x37c   :  { %1462 = vmatpush3.bf16.msra.mxu0 %v1661_v8 }
 0x37d   :  { %1463 = vmatprep.subr.bf16.mxu0 %v1662_v9 }
 0x380   :  { %1464 = vmatpush3.bf16.msra.mxu0 %v1663_v10 }
 0x381   :  { %1465 = vmatprep.subr.bf16.mxu0 %v1664_v11 }
 0x384   :  { %1466 = vmatpush3.bf16.msra.mxu0 %v1665_v12 }
 0x385   :  { %1467 = vmatprep.subr.bf16.mxu0 %v1666_v13 }
 0x388   :  { %1468 = vmatpush3.bf16.msra.mxu0 %v1667_v14 }
 0x389   :  { %1469 = vmatprep.subr.bf16.mxu0 %v1668_v15 }
 0x38c   :  { %1470 = vmatpush3.bf16.msra.mxu0 %v1669_v16 }
 0x38d   :  { %1471 = vmatprep.subr.bf16.mxu0 %v1670_v17 }
 0x390   :  { %1472 = vmatpush3.bf16.msra.mxu0 %v1671_v18 }
 0x391   :  { %1473 = vmatprep.subr.bf16.mxu0 %v1672_v19 }
 0x394   :  { %1474 = vmatpush3.bf16.msra.mxu0 %v1673_v20 }
 0x395   :  { %1475 = vmatprep.subr.bf16.mxu0 %v1674_v21 }
 0x398   :  { %1476 = vmatpush3.bf16.msra.mxu0 %v1675_v22 }
 0x44e   :  { %v840_v41 = vpop.f32.mrb[4].mxu0 }
 0x44f   :  { %v841_v42 = vadd.f32 %v840_v41, %v639_v39  ;;  %v842_v43 = vpop.f32.mrb[5].mxu0 }
 0x450   :  { %v843_v44 = vadd.f32 %v842_v43, %v643_v40  ;;  %v844_v46 = vpop.f32.mrb[6].mxu0 }
 0x451   :  { %v847_v48 = vmin.f32 %v841_v42, 20.0  ;;  %v845_v49 = vpop.f32.mrb[7].mxu0  ;;  %vm863_vm7 = vcmp.gt.f32.partialorder %v841_v42, 20.0 }
 0x452   :  { %v848_v50 = vmin.f32 %v843_v44, 20.0  ;;  %vm864_vm8 = vcmp.gt.f32.partialorder %v843_v44, 20.0 }
 0x453   :  { %v849_v51 = vmul.f32 1.442695, %v847_v48 }
 0x454   :  { %v851_v52 = vmul.f32 1.442695, %v848_v50 }
 0x455   :  { %1688 = vpow2.f32 %v849_v51 }
 0x456   :  { %1690 = vpow2.f32 %v851_v52 }
 0x45f   :  { %v1689_v53 = vpop.eup %1688 }
 0x460   :  { %v1691_v54 = vpop.eup %1690  ;;  %v853_v55 = vadd.f32 2.0, %v1689_v53 }
 0x461   :  { %v854_v56 = vadd.f32 2.0, %v1691_v54 }
 0x462   :  { %v855_v57 = vmul.f32 %v1689_v53, %v853_v55  ;;  %v1433_v55 = vld [vmem:[%s2243_s14] ss:$0 sm:$0xff] }
 0x463   :  { %v856_v58 = vmul.f32 %v1691_v54, %v854_v56 }
 0x464   :  { %v857_v59 = vadd.f32 2.0, %v855_v57 }
 0x465   :  { %v858_v60 = vadd.f32 2.0, %v856_v58 }
 0x466   :  { %1692 = vrcp.f32 %v857_v59 }
 0x467   :  { %1694 = vrcp.f32 %v858_v60 }
 0x470   :  { %v1693_v61 = vpop.eup %1692 }
 0x471   :  { %v1695_v62 = vpop.eup %1694  ;;  %v861_v63 = vmul.f32 %v1693_v61, %v855_v57 }
 0x472   :  { %v862_v0 = vmul.f32 %v1695_v62, %v856_v58 }
 0x473   :  { %v865_v1 = vsel %vm863_vm7, 1.0, %v861_v63 }
 0x474   :  { %v867_v2 = vmul.f32 %v865_v1, %v841_v42  ;;  %v866_v3 = vsel %vm864_vm8, 1.0, %v862_v0 }
 0x475   :  { %v868_v4 = vmul.f32 %v866_v3, %v843_v44 }
 0x476   :  { %v869_v6 = vpack.c.bf16 %v867_v2, %v867_v2 }
 0x477   :  { %v870_v5 = vpack.c.bf16 %v868_v4, %v868_v4 }
 0x479   :  { %1107 = vmatprep.mubr.bf16.mxu1 %v870_v5 }
 0x47a   :  { %1108 = vmatmul.mubr.bf16.vlgmr.msra.gmra.mrb[12].mxu1 %v869_v6 }
 0x54d   :  { %v1109_v26 = vpop.f32.mrb[12].mxu1 }
 0x54e   :  { %v1110_v27 = vadd.f32 %v1109_v26, %v908_v24  ;;  %v1111_v28 = vpop.f32.mrb[13].mxu1 }
 0x54f   :  { %v1112_v29 = vadd.f32 %v1111_v28, %v912_v25  ;;  %v1113_v30 = vpop.f32.mrb[14].mxu1 }
 0x550   :  { %v1116_v31 = vmin.f32 %v1110_v27, 20.0  ;;  %v1114_v32 = vpop.f32.mrb[15].mxu1  ;;  %vm1132_vm9 = vcmp.gt.f32.partialorder %v1110_v27, 20.0 }
 0x551   :  { %v1117_v33 = vmin.f32 %v1112_v29, 20.0  ;;  %vm1133_vm10 = vcmp.gt.f32.partialorder %v1112_v29, 20.0 }
 0x552   :  { %v1118_v34 = vmul.f32 1.442695, %v1116_v31 }
 0x553   :  { %v1120_v35 = vmul.f32 1.442695, %v1117_v33 }
 0x554   :  { %1696 = vpow2.f32 %v1118_v34 }
 0x555   :  { %1698 = vpow2.f32 %v1120_v35 }
 0x55e   :  { %v1697_v36 = vpop.eup %1696 }
 0x55f   :  { %v1699_v37 = vpop.eup %1698  ;;  %v1122_v38 = vadd.f32 2.0, %v1697_v36 }
 0x560   :  { %v1123_v39 = vadd.f32 2.0, %v1699_v37 }
 0x561   :  { %v1124_v40 = vmul.f32 %v1697_v36, %v1122_v38 }
 0x562   :  { %v1125_v45 = vmul.f32 %v1699_v37, %v1123_v39 }
 0x563   :  { %v1126_v41 = vadd.f32 2.0, %v1124_v40 }
 0x564   :  { %v1127_v47 = vadd.f32 2.0, %v1125_v45 }
 0x565   :  { %1700 = vrcp.f32 %v1126_v41 }
 0x566   :  { %1702 = vrcp.f32 %v1127_v47 }
 0x56f   :  { %v1701_v42 = vpop.eup %1700 }
 0x570   :  { %v1703_v43 = vpop.eup %1702  ;;  %v1130_v44 = vmul.f32 %v1701_v42, %v1124_v40 }
 0x571   :  { %v1131_v46 = vmul.f32 %v1703_v43, %v1125_v45 }
 0x572   :  { %v1134_v48 = vsel %vm1132_vm9, 1.0, %v1130_v44 }
 0x573   :  { %v1136_v49 = vmul.f32 %v1134_v48, %v1110_v27  ;;  %v1135_v50 = vsel %vm1133_vm10, 1.0, %v1131_v46 }
 0x574   :  { %v1137_v51 = vmul.f32 %v1135_v50, %v1112_v29 }
 0x575   :  { %v1138_v53 = vpack.c.bf16 %v1136_v49, %v1136_v49 }
 0x576   :  { %v1139_v52 = vpack.c.bf16 %v1137_v51, %v1137_v51 }
 0x578   :  { %1307 = vmatprep.mubr.bf16.mxu0 %v1139_v52 }
 0x579   :  { %1308 = vmatmul.mubr.bf16.vlgmr.msra.gmra.mrb[8].mxu0 %v1138_v53 }
 0x64c   :  { %v1477_v54 = vpop.f32.mrb[8].mxu0 }
 0x64d   :  { %v1478_v56 = vpop.f32.mrb[9].mxu0 }
 0x64e   :  { %v1479_v57 = vadd.f32 %v1478_v56, %v1477_v54  ;;  %v1480_v58 = vpop.f32.mrb[10].mxu0 }
 0x64f   :  { %v1481_v59 = vpop.f32.mrb[11].mxu0 }
 0x650   :  { %v1310_v60 = vadd.f32 %v1479_v57, %v1433_v55 }
 0x652   :  { %1315 = vst [vmem:[#allocation17] sm:$0xff] %v1310_v60 }
 0x653   :  { %1913 = shalt.err (!%p1910_p6)
}
 0x654   :  { %s1914_s14 = scalar_lea.hbm %s2244_s15, 128 }
 0x655   :  { %p1915_p7 = scmp.ne.s32.totalorder %s2244_s15, %s1914_s14  ;;  %p1918_p8 = scmp.lt.u32.totalorder %s1914_s14, %s2244_s15 }
 0x657   :  { %p1920_p9 = pnand %p1918_p8, %p1915_p7 }
 0x659   :  { %1923 = shalt.err (!%p1920_p9)
}
 0x65a   :  { %1325 = dma.vmem_to_hbm [thread:$0]  %s1323_s29, 128, %s2244_s15, [#allocation4]  }
 0x65b   :  { %1934 = dma.done.wait [#allocation4], 128  }
 0x65c   :  { %1935 = vsyncadd [#allocation4], 4294967168 }
 0x65d   :  { %1329 = vsyncpa [#allocation3], 1 }
 0x65e   :  { %1330 = vsyncpa [#allocation6], 1 }
 0x65f   :  { %1331 = vsyncpa [#allocation9], 1 }
 0x660   :  { %1332 = vsyncpa [#allocation12], 1 }
 0x661   :  { %1333 = vsyncpa [#allocation15], 1 }
 0x662   :  { %1334 = vsyncpa [#allocation4], 1 }

</bundles_post_ra>
